<compile_context>
chip_gen: v7x
topology: tpu7x:2x2x1
jax: 0.10.0
libtpu: 0.0.40
codegen_flags: <defaults>
</compile_context>

<pallas_src>
import numpy as np
import jax
import jax.numpy as jnp
from jax.experimental import pallas as pl
from jax.experimental.pallas import tpu as pltpu


_COMPILER_PARAMS = pltpu.CompilerParams(
    dimension_semantics=("parallel",),       # grid steps can be split across v7x's 2 TCs
    vmem_limit_bytes=32 * 1024 * 1024,       # safe on v5e/v6e/v7x; per-step footprint is tiny
)


# ------------------------------- in-kernel math -------------------------------

def gelu_tanh(x):
    # TODO(synk): PyTorch nn.GELU() default is the exact erf form; the tanh approximation is
    # used for Mosaic-safe transcendentals (abs diff ~1e-3).
    return 0.5 * x * (1.0 + jnp.tanh(0.7978845608028654 * (x + 0.044715 * x * x * x)))


def _stage_padded(pad_ref, x_val, p):
    """Write x (b, H, W*C) into a vertically zero-padded bf16 scratch (b, H+2p, W*C).
    Only the 2p halo rows are zeroed, every step (cheap; interior is fully overwritten, and
    this stays correct when grid steps land on different TensorCores)."""
    b, Hp, L = pad_ref.shape
    H = Hp - 2 * p
    zeros = jnp.zeros((b, p, L), pad_ref.dtype)
    pad_ref[:, 0:p, :] = zeros
    pad_ref[:, p + H:p + H + p, :] = zeros
    pad_ref[:, p:p + H, :] = x_val.astype(pad_ref.dtype)


def _banded_conv(pad_ref, w_ref, K, b, H):
    """sum_ky  band_ky (b*H, W*Cin) @ w_ref[ky] (W*Cin, W*Cout)  -> (b*H, W*Cout) f32.
    Each band is a contiguous sublane slice of the lane-flat padded scratch; the host-built
    block-Toeplitz weight (BN scale folded, bf16) carries the kx taps + horizontal padding."""
    L_in = pad_ref.shape[-1]
    acc = None
    for ky in range(K):
        band = pad_ref[:, ky:ky + H, :].reshape(b * H, L_in)
        part = jnp.dot(band, w_ref[ky], preferred_element_type=jnp.float32)
        acc = part if acc is None else acc + part
    return acc


def _avg_pool_lane_flat(z, pool_ref, b, H, r):
    """AvgPool2d(r) on lane-flat (b*H, W*C): vertical = sublane adds, horizontal = one
    lane-dense matmul with the host-built (W*C, Wo*C) averaging matrix (includes 1/r^2)."""
    L = z.shape[-1]
    Ho = H // r
    zr = z.reshape(b * Ho, r, L)
    vs = zr[:, 0, :]
    for dy in range(1, r):
        vs = vs + zr[:, dy, :]
    return jnp.dot(vs, pool_ref[...], preferred_element_type=jnp.float32)   # (b*Ho, Wo*C)


# ---------------------------------- kernels -----------------------------------

def make_ch_enc_kernel(H, W, Cin, Cout, K, r, b):
    """Fused Conv5x5(+bias) -> BN -> LeakyReLU(0.1) -> AvgPool(r); b images per grid step."""
    p = K // 2
    Ho, Wo = H // r, W // r

    def kernel(x_ref, wt_ref, sh_ref, ph_ref, out_ref, xpad):
        _stage_padded(xpad, x_ref[...], p)
        y = _banded_conv(xpad, wt_ref, K, b, H)          # (b*H, W*Cout) f32, BN scale folded
        y = y + sh_ref[...]                              # conv bias + BN shift (lane-tiled)
        y = jnp.where(y > 0, y, 0.1 * y)                 # LeakyReLU(0.1)
        pooled = _avg_pool_lane_flat(y, ph_ref, b, H, r)
        out_ref[...] = pooled.reshape(b, Ho, Wo * Cout)

    return kernel


def make_rblock_kernel(H, W, Cin, Cmid, Cout, r, b, has_skip, is_last):
    """Fused RBlockN: conv1+BN1+GELU -> conv2+BN2 -> (+1x1 skip) -> GELU -> AvgPool(r).
    For the last block the AvgPool + channel chunk + mu Linear are folded into one matmul
    (weights prepared on the host) and the kernel emits mu directly."""
    K, p = 3, 1
    Ho, Wo = H // r, W // r
    needs_pool = (not is_last) and r > 1

    def kernel(*refs):
        it = iter(refs)
        x_ref = next(it)
        w1_ref, sh1_ref = next(it), next(it)
        w2_ref, sh2_ref = next(it), next(it)
        wsk_ref = next(it) if has_skip else None
        muw_ref = mub_ref = ph_ref = None
        if is_last:
            muw_ref, mub_ref = next(it), next(it)
        elif needs_pool:
            ph_ref = next(it)
        out_ref = next(it)
        xpad, hpad = next(it), next(it)

        xb = x_ref[...]                                  # (b, H, W*Cin) f32

        # conv1 -> BN1 -> GELU
        _stage_padded(xpad, xb, p)
        h = _banded_conv(xpad, w1_ref, K, b, H)
        h = gelu_tanh(h + sh1_ref[...])                  # (b*H, W*Cmid) f32

        # conv2 -> BN2
        _stage_padded(hpad, h.reshape(b, H, W * Cmid), p)
        h2 = _banded_conv(hpad, w2_ref, K, b, H) + sh2_ref[...]

        # skip path: 1x1 conv (block-diag weight) iff Cin != Cout, else identity (f32)
        if has_skip:
            skip = jnp.dot(xpad[:, p:p + H, :].reshape(b * H, W * Cin), wsk_ref[...],
                           preferred_element_type=jnp.float32)
        else:
            skip = xb.reshape(b * H, W * Cout)           # Cin == Cout

        z = gelu_tanh(h2 + skip)                         # (b*H, W*Cout) f32

        if is_last:
            # final AvgPool + chunk(dim=1) + mu Linear all folded into muw on the host:
            # one (b, H*W*Cout) @ (H*W*Cout, Z) MXU matmul.
            feat = z.reshape(b, H * W * Cout).astype(jnp.bfloat16)
            mu = jnp.dot(feat, muw_ref[...], preferred_element_type=jnp.float32) + mub_ref[...]
            out_ref[...] = mu.reshape(b, 1, mu.shape[-1])
        elif needs_pool:
            pooled = _avg_pool_lane_flat(z, ph_ref, b, H, r)
            out_ref[...] = pooled.reshape(b, Ho, Wo * Cout)
        else:
            out_ref[...] = z.reshape(b, H, W * Cout)

    return kernel


# ---------------------------- host-side weight prep ----------------------------

def bn_fold(gamma, beta, mean, var, conv_bias=None, eps=1e-5):
    scale = np.asarray(gamma, np.float32) / np.sqrt(np.asarray(var, np.float32) + eps)
    b = np.asarray(conv_bias, np.float32) if conv_bias is not None else np.float32(0.0)
    shift = np.asarray(beta, np.float32) + scale * (b - np.asarray(mean, np.float32))
    return scale, shift


def _banded_conv_weight(w_oihw, scale, W):
    """OIHW conv weight (with per-cout BN scale folded) -> (K, W*Cin, W*Cout) bf16
    block-Toeplitz weights for the lane-flat per-ky band matmul."""
    w = np.asarray(w_oihw, np.float32) * np.asarray(scale, np.float32)[:, None, None, None]
    Cout, Cin, K, _ = w.shape
    p = K // 2
    wk = np.transpose(w, (2, 3, 1, 0))                   # (K, K, Cin, Cout)
    T = np.zeros((K, W, Cin, W, Cout), np.float32)
    for ky in range(K):
        for kx in range(K):
            d = kx - p
            for xo in range(W):
                xi = xo + d
                if 0 <= xi < W:
                    T[ky, xi, :, xo, :] = wk[ky, kx]
    return jnp.asarray(T.reshape(K, W * Cin, W * Cout), dtype=jnp.bfloat16)


def _blockdiag_1x1_weight(w_oi11, W):
    """1x1 conv weight -> (W*Cin, W*Cout) bf16 block-diagonal matrix (lane-flat skip path)."""
    w = np.asarray(w_oi11, np.float32).reshape(w_oi11.shape[0], w_oi11.shape[1])  # (Cout, Cin)
    Cout, Cin = w.shape
    T = np.zeros((W, Cin, W, Cout), np.float32)
    for x in range(W):
        T[x, :, x, :] = w.T
    return jnp.asarray(T.reshape(W * Cin, W * Cout), dtype=jnp.bfloat16)


def _hpool_matrix(W, C, r):
    """Horizontal AvgPool(r) as a (W*C, Wo*C) matrix; carries the full 1/r^2 factor."""
    Wo = W // r
    P = np.zeros((W, C, Wo, C), np.float32)
    cc = np.arange(C)
    for xo in range(Wo):
        for dx in range(r):
            P[xo * r + dx, cc, xo, cc] = 1.0 / (r * r)
    return jnp.asarray(P.reshape(W * C, Wo * C), dtype=jnp.float32)


def _fold_mu_weight(mu_w, mu_b, H, W, Cout, r):
    """Fold the last block's AvgPool(r) + channel chunk + mu Linear into one (H*W*Cout, Z)
    matrix acting on the lane-flat, un-pooled final activation (y, x, c order)."""
    Z, F = mu_w.shape
    ch = Cout // 2
    Ho, Wo = H // r, W // r
    assert F == ch * Ho * Wo
    Wm = np.asarray(mu_w, np.float32).reshape(Z, ch, Ho, Wo)        # NCHW flatten order
    Wm = np.repeat(np.repeat(Wm, r, axis=2), r, axis=3) / float(r * r)
    full = np.zeros((Z, Cout, H, W), np.float32)
    full[:, :ch] = Wm                                               # second channel half dropped
    full = np.transpose(full, (2, 3, 1, 0)).reshape(H * W * Cout, Z)
    return (jnp.asarray(full, dtype=jnp.bfloat16),
            jnp.asarray(np.asarray(mu_b, np.float32).reshape(1, Z)))


def _tiled_shift(shift, W):
    """Per-channel shift -> lane-tiled (1, W*C) f32 row matching the (x*C + c) lane order."""
    return jnp.asarray(np.tile(np.asarray(shift, np.float32), W).reshape(1, -1))


def _pick_images_per_step(N, per_image_bytes, budget_bytes=16 * 1024 * 1024):
    """Largest divisor b of N fitting the VMEM budget; prefer an even grid length N//b so
    v7x's two TensorCores both get grid steps under ("parallel",) semantics."""
    divisors = [d for d in range(1, N + 1) if N % d == 0]
    fits = [d for d in divisors if d * per_image_bytes <= budget_bytes] or [1]
    even = [d for d in fits if (N // d) % 2 == 0]
    return max(even) if even else max(fits)


def _full_spec(arr):
    nd = arr.ndim
    return pl.BlockSpec(arr.shape, lambda g, _nd=nd: (0,) * _nd)


# ------------------------------- stage wrappers --------------------------------

def ch_enc(x_flat, p, r=2):
    """x_flat: (N, H, W*img_ch) lane-flat NHWC. Returns ((N, Ho, Wo*C0) f32, spatial)."""
    N, H, WC = x_flat.shape
    C0, Cin, K, _ = p['conv0_w'].shape
    W = WC // Cin
    assert H % r == 0 and W % r == 0   # TODO(synk): PyTorch AvgPool2d floors non-divisible sizes
    Ho, Wo = H // r, W // r
    pad = K // 2

    scale, shift = bn_fold(p['bn0_g'], p['bn0_b'], p['bn0_m'], p['bn0_v'], p['conv0_b'])
    wt = _banded_conv_weight(p['conv0_w'], scale, W)       # (K, W*Cin, W*C0) bf16
    sh = _tiled_shift(shift, W)                            # (1, W*C0) f32
    ph = _hpool_matrix(W, C0, r)                           # (W*C0, Wo*C0) f32

    per_img = 4 * H * W * (2 * Cin + 3 * C0) + 2 * (H + 2 * pad) * W * Cin
    b = _pick_images_per_step(N, per_img)

    out = pl.pallas_call(
        make_ch_enc_kernel(H, W, Cin, C0, K, r, b),
        out_shape=jax.ShapeDtypeStruct((N, Ho, Wo * C0), jnp.float32),
        grid=(N // b,),
        in_specs=[pl.BlockSpec((b, H, W * Cin), lambda g: (g, 0, 0)),
                  _full_spec(wt), _full_spec(sh), _full_spec(ph)],
        out_specs=pl.BlockSpec((b, Ho, Wo * C0), lambda g: (g, 0, 0)),
        scratch_shapes=[pltpu.VMEM((b, H + 2 * pad, W * Cin), jnp.bfloat16)],
        compiler_params=_COMPILER_PARAMS,
    )(x_flat, wt, sh, ph)
    return out, (Ho, Wo, C0)


def rblock(x_flat, spatial, blk, mu_params=None):
    N = x_flat.shape[0]
    H, W, Cin = spatial
    Cmid = blk['conv1_w'].shape[0]
    Cout = blk['conv2_w'].shape[0]
    r = blk['down_rate'] if blk['down_rate'] is not None else 1
    assert H % r == 0 and W % r == 0
    Ho, Wo = H // r, W // r
    has_skip = (blk['size_conv_w'] is not None) and (Cin != Cout)
    is_last = mu_params is not None

    s1, t1 = bn_fold(blk['bn1_g'], blk['bn1_b'], blk['bn1_m'], blk['bn1_v'])
    s2, t2 = bn_fold(blk['bn2_g'], blk['bn2_b'], blk['bn2_m'], blk['bn2_v'])
    w1 = _banded_conv_weight(blk['conv1_w'], s1, W)        # (3, W*Cin,  W*Cmid) bf16
    w2 = _banded_conv_weight(blk['conv2_w'], s2, W)        # (3, W*Cmid, W*Cout) bf16
    sh1 = _tiled_shift(t1, W)
    sh2 = _tiled_shift(t2, W)

    per_img = (4 * H * W * (2 * Cin + Cmid + 3 * Cout)
               + 2 * (H + 2) * W * (Cin + Cmid))
    b = _pick_images_per_step(N, per_img)

    args = [x_flat, w1, sh1, w2, sh2]
    in_specs = [pl.BlockSpec((b, H, W * Cin), lambda g: (g, 0, 0)),
                _full_spec(w1), _full_spec(sh1), _full_spec(w2), _full_spec(sh2)]

    if has_skip:
        wsk = _blockdiag_1x1_weight(blk['size_conv_w'], W)
        args.append(wsk)
        in_specs.append(_full_spec(wsk))

    if is_last:
        muw, mub = _fold_mu_weight(mu_params[0], mu_params[1], H, W, Cout, r)
        Z = mub.shape[-1]
        args += [muw, mub]
        in_specs += [_full_spec(muw), _full_spec(mub)]
        out_shape = jax.ShapeDtypeStruct((N, 1, Z), jnp.float32)
        out_spec = pl.BlockSpec((b, 1, Z), lambda g: (g, 0, 0))
    else:
        if r > 1:
            ph = _hpool_matrix(W, Cout, r)
            args.append(ph)
            in_specs.append(_full_spec(ph))
        out_shape = jax.ShapeDtypeStruct((N, Ho, Wo * Cout), jnp.float32)
        out_spec = pl.BlockSpec((b, Ho, Wo * Cout), lambda g: (g, 0, 0))

    out = pl.pallas_call(
        make_rblock_kernel(H, W, Cin, Cmid, Cout, r, b, has_skip, is_last),
        out_shape=out_shape,
        grid=(N // b,),
        in_specs=in_specs,
        out_specs=out_spec,
        scratch_shapes=[pltpu.VMEM((b, H + 2, W * Cin), jnp.bfloat16),
                        pltpu.VMEM((b, H + 2, W * Cmid), jnp.bfloat16)],
        compiler_params=_COMPILER_PARAMS,
    )(*args)

    if is_last:
        return out.reshape(N, -1), None                     # (N, size_z)
    return out, (Ho, Wo, Cout)


# -------------------------------- parameter init -------------------------------

def init_params(key, channel_list, img_ch, size_z, size_z_lin):
    ks = iter(jax.random.split(key, 64))

    def nrm(shape, s=0.2):
        return s * jax.random.normal(next(ks), shape, dtype=jnp.float32)

    def pos(shape):
        return 0.5 + jax.random.uniform(next(ks), shape, dtype=jnp.float32)

    c0 = channel_list[0][0]
    params = {
        'conv0_w': nrm((c0, img_ch, 5, 5)),
        'conv0_b': nrm((c0,)),
        'bn0_g': 1.0 + nrm((c0,), 0.1), 'bn0_b': nrm((c0,), 0.1),
        'bn0_m': nrm((c0,), 0.1), 'bn0_v': pos((c0,)),
        'blocks': [],
    }
    for (cin, cmid, cout, down) in channel_list:
        blk = {
            'conv1_w': nrm((cmid, cin, 3, 3)),
            'bn1_g': 1.0 + nrm((cmid,), 0.1), 'bn1_b': nrm((cmid,), 0.1),
            'bn1_m': nrm((cmid,), 0.1), 'bn1_v': pos((cmid,)),
            'conv2_w': nrm((cout, cmid, 3, 3)),
            'bn2_g': 1.0 + nrm((cout,), 0.1), 'bn2_b': nrm((cout,), 0.1),
            'bn2_m': nrm((cout,), 0.1), 'bn2_v': pos((cout,)),
            'size_conv_w': nrm((cout, cin, 1, 1)) if cin != cout else None,
            'down_rate': down,
        }
        params['blocks'].append(blk)
    params['mu_w'] = nrm((size_z, size_z_lin))
    params['mu_b'] = nrm((size_z,))
    # logvar_lin exists in the module but is unused by forward -> omitted.
    return params


# --------------------------------- full forward --------------------------------

def res_encoder_forward(x_nchw, params):
    N, Cimg, Hin, Win = x_nchw.shape
    # NCHW -> lane-flat NHWC (N, H, W*C); one-time host-side glue.
    x = jnp.transpose(x_nchw, (0, 2, 3, 1)).reshape(N, Hin, Win * Cimg).astype(jnp.float32)

    xf, sp = ch_enc(x, params, r=2)

    blocks = params['blocks']
    for bi, blk in enumerate(blocks):
        is_last = bi == len(blocks) - 1
        mu_params = (params['mu_w'], params['mu_b']) if is_last else None
        xf, sp = rblock(xf, sp, blk, mu_params)
    return xf   # (N, size_z)


# -------------------------------------- main -----------------------------------

if __name__ == "__main__":
    # small config consistent with the module:
    #   channel_list entries = (in_width, middle_width, out_width, down_rate)
    B = 2
    img_ch = 3
    size_in = 16
    size_z = 8
    channel_list = [(4, 4, 8, 2), (8, 8, 8, 2)]

    init_size = size_in // 2
    for i in channel_list:
        init_size = init_size // i[3]
    size_z_lin = init_size * init_size * (channel_list[-1][2] // 2)   # = 16

    key = jax.random.PRNGKey(0)
    k_par, k_x = jax.random.split(key)
    params = init_params(k_par, channel_list, img_ch, size_z, size_z_lin)

    x = jax.random.normal(k_x, (B, img_ch, size_in, size_in), dtype=jnp.float32)

    mu = res_encoder_forward(x, params)
    mu = jax.block_until_ready(mu)
    assert mu.shape == (B, size_z), mu.shape
    assert bool(jnp.all(jnp.isfinite(mu)))
    print("KERNEL_OK")
</pallas_src>

<mosaic_0001>
module attributes {stable_mosaic.version = 11 : i64} {
  func.func @kernel(%arg0: i32, %arg1: memref<1x16x48xf32, #tpu.memory_space<vmem>>, %arg2: memref<5x48x64xbf16, #tpu.memory_space<vmem>>, %arg3: memref<1x64xf32, #tpu.memory_space<vmem>>, %arg4: memref<64x32xf32, #tpu.memory_space<vmem>>, %arg5: memref<1x8x32xf32, #tpu.memory_space<vmem>>, %arg6: memref<1x20x48xbf16, #tpu.memory_space<vmem>>) attributes {dimension_semantics = [#tpu.dimension_semantics<parallel>], iteration_bounds = array<i64: 2>, scalar_prefetch = 0 : i64, scratch_operands = 1 : i64, tpu.core_type = #tpu.core_type<tc>, window_params = [{transform_indices = @transform_0, window_bounds = array<i64: 1, 16, 48>}, {pipeline_mode = #tpu.pipeline_mode<synchronous>, transform_indices = @transform_1, window_bounds = array<i64: 5, 48, 64>}, {pipeline_mode = #tpu.pipeline_mode<synchronous>, transform_indices = @transform_2, window_bounds = array<i64: 1, 64>}, {pipeline_mode = #tpu.pipeline_mode<synchronous>, transform_indices = @transform_3, window_bounds = array<i64: 64, 32>}, {transform_indices = @transform_4, window_bounds = array<i64: 1, 8, 32>}]} {
    %c0 = arith.constant 0 : index
    %c0_0 = arith.constant 0 : index
    %c0_1 = arith.constant 0 : index
    %0 = vector.load %arg1[%c0, %c0_0, %c0_1] : memref<1x16x48xf32, #tpu.memory_space<vmem>>, vector<1x16x48xf32>
    %cst = arith.constant 0.000000e+00 : bf16
    %1 = vector.broadcast %cst : bf16 to vector<1x2x48xbf16>
    %c0_2 = arith.constant 0 : index
    %c0_3 = arith.constant 0 : index
    %c0_4 = arith.constant 0 : index
    %2 = vector.load %arg6[%c0_2, %c0_3, %c0_4] : memref<1x20x48xbf16, #tpu.memory_space<vmem>>, vector<1x2x48xbf16>
    tpu.vector_store %arg6[%c0_2, %c0_3, %c0_4], %1 {strides = array<i32>} : memref<1x20x48xbf16, #tpu.memory_space<vmem>>, vector<1x2x48xbf16>,
    %c0_5 = arith.constant 0 : index
    %c18 = arith.constant 18 : index
    %c0_6 = arith.constant 0 : index
    %3 = vector.load %arg6[%c0_5, %c18, %c0_6] : memref<1x20x48xbf16, #tpu.memory_space<vmem>>, vector<1x2x48xbf16>
    tpu.vector_store %arg6[%c0_5, %c18, %c0_6], %1 {strides = array<i32>} : memref<1x20x48xbf16, #tpu.memory_space<vmem>>, vector<1x2x48xbf16>,
    %4 = arith.truncf %0 : vector<1x16x48xf32> to vector<1x16x48xbf16>
    %c0_7 = arith.constant 0 : index
    %c2 = arith.constant 2 : index
    %c0_8 = arith.constant 0 : index
    %5 = vector.load %arg6[%c0_7, %c2, %c0_8] : memref<1x20x48xbf16, #tpu.memory_space<vmem>>, vector<1x16x48xbf16>
    tpu.vector_store %arg6[%c0_7, %c2, %c0_8], %4 {strides = array<i32>} : memref<1x20x48xbf16, #tpu.memory_space<vmem>>, vector<1x16x48xbf16>,
    %c0_9 = arith.constant 0 : index
    %c0_10 = arith.constant 0 : index
    %c0_11 = arith.constant 0 : index
    %6 = vector.load %arg6[%c0_9, %c0_10, %c0_11] : memref<1x20x48xbf16, #tpu.memory_space<vmem>>, vector<1x16x48xbf16>
    %7 = vector.shape_cast %6 : vector<1x16x48xbf16> to vector<16x48xbf16>
    %c0_12 = arith.constant 0 : index
    %c0_13 = arith.constant 0 : index
    %c0_14 = arith.constant 0 : index
    %8 = vector.load %arg2[%c0_12, %c0_13, %c0_14] : memref<5x48x64xbf16, #tpu.memory_space<vmem>>, vector<1x48x64xbf16>
    %9 = vector.shape_cast %8 : vector<1x48x64xbf16> to vector<48x64xbf16>
    %cst_15 = arith.constant dense<0.000000e+00> : vector<16x64xf32>
    %10 = tpu.matmul %7, %9, %cst_15 {dimension_numbers = #tpu.dot_dimension_numbers<[1], [0], [0], [1], [0, 0, 1, 1], [], []>} : vector<16x48xbf16>, vector<48x64xbf16>, vector<16x64xf32> -> vector<16x64xf32>
    %c0_16 = arith.constant 0 : index
    %c1 = arith.constant 1 : index
    %c0_17 = arith.constant 0 : index
    %11 = vector.load %arg6[%c0_16, %c1, %c0_17] : memref<1x20x48xbf16, #tpu.memory_space<vmem>>, vector<1x16x48xbf16>
    %12 = vector.shape_cast %11 : vector<1x16x48xbf16> to vector<16x48xbf16>
    %c1_18 = arith.constant 1 : index
    %c0_19 = arith.constant 0 : index
    %c0_20 = arith.constant 0 : index
    %13 = vector.load %arg2[%c1_18, %c0_19, %c0_20] : memref<5x48x64xbf16, #tpu.memory_space<vmem>>, vector<1x48x64xbf16>
    %14 = vector.shape_cast %13 : vector<1x48x64xbf16> to vector<48x64xbf16>
    %cst_21 = arith.constant dense<0.000000e+00> : vector<16x64xf32>
    %15 = tpu.matmul %12, %14, %cst_21 {dimension_numbers = #tpu.dot_dimension_numbers<[1], [0], [0], [1], [0, 0, 1, 1], [], []>} : vector<16x48xbf16>, vector<48x64xbf16>, vector<16x64xf32> -> vector<16x64xf32>
    %16 = arith.addf %10, %15 : vector<16x64xf32>
    %c0_22 = arith.constant 0 : index
    %c2_23 = arith.constant 2 : index
    %c0_24 = arith.constant 0 : index
    %17 = vector.load %arg6[%c0_22, %c2_23, %c0_24] : memref<1x20x48xbf16, #tpu.memory_space<vmem>>, vector<1x16x48xbf16>
    %18 = vector.shape_cast %17 : vector<1x16x48xbf16> to vector<16x48xbf16>
    %c2_25 = arith.constant 2 : index
    %c0_26 = arith.constant 0 : index
    %c0_27 = arith.constant 0 : index
    %19 = vector.load %arg2[%c2_25, %c0_26, %c0_27] : memref<5x48x64xbf16, #tpu.memory_space<vmem>>, vector<1x48x64xbf16>
    %20 = vector.shape_cast %19 : vector<1x48x64xbf16> to vector<48x64xbf16>
    %cst_28 = arith.constant dense<0.000000e+00> : vector<16x64xf32>
    %21 = tpu.matmul %18, %20, %cst_28 {dimension_numbers = #tpu.dot_dimension_numbers<[1], [0], [0], [1], [0, 0, 1, 1], [], []>} : vector<16x48xbf16>, vector<48x64xbf16>, vector<16x64xf32> -> vector<16x64xf32>
    %22 = arith.addf %16, %21 : vector<16x64xf32>
    %c0_29 = arith.constant 0 : index
    %c3 = arith.constant 3 : index
    %c0_30 = arith.constant 0 : index
    %23 = vector.load %arg6[%c0_29, %c3, %c0_30] : memref<1x20x48xbf16, #tpu.memory_space<vmem>>, vector<1x16x48xbf16>
    %24 = vector.shape_cast %23 : vector<1x16x48xbf16> to vector<16x48xbf16>
    %c3_31 = arith.constant 3 : index
    %c0_32 = arith.constant 0 : index
    %c0_33 = arith.constant 0 : index
    %25 = vector.load %arg2[%c3_31, %c0_32, %c0_33] : memref<5x48x64xbf16, #tpu.memory_space<vmem>>, vector<1x48x64xbf16>
    %26 = vector.shape_cast %25 : vector<1x48x64xbf16> to vector<48x64xbf16>
    %cst_34 = arith.constant dense<0.000000e+00> : vector<16x64xf32>
    %27 = tpu.matmul %24, %26, %cst_34 {dimension_numbers = #tpu.dot_dimension_numbers<[1], [0], [0], [1], [0, 0, 1, 1], [], []>} : vector<16x48xbf16>, vector<48x64xbf16>, vector<16x64xf32> -> vector<16x64xf32>
    %28 = arith.addf %22, %27 : vector<16x64xf32>
    %c0_35 = arith.constant 0 : index
    %c4 = arith.constant 4 : index
    %c0_36 = arith.constant 0 : index
    %29 = vector.load %arg6[%c0_35, %c4, %c0_36] : memref<1x20x48xbf16, #tpu.memory_space<vmem>>, vector<1x16x48xbf16>
    %30 = vector.shape_cast %29 : vector<1x16x48xbf16> to vector<16x48xbf16>
    %c4_37 = arith.constant 4 : index
    %c0_38 = arith.constant 0 : index
    %c0_39 = arith.constant 0 : index
    %31 = vector.load %arg2[%c4_37, %c0_38, %c0_39] : memref<5x48x64xbf16, #tpu.memory_space<vmem>>, vector<1x48x64xbf16>
    %32 = vector.shape_cast %31 : vector<1x48x64xbf16> to vector<48x64xbf16>
    %cst_40 = arith.constant dense<0.000000e+00> : vector<16x64xf32>
    %33 = tpu.matmul %30, %32, %cst_40 {dimension_numbers = #tpu.dot_dimension_numbers<[1], [0], [0], [1], [0, 0, 1, 1], [], []>} : vector<16x48xbf16>, vector<48x64xbf16>, vector<16x64xf32> -> vector<16x64xf32>
    %34 = arith.addf %28, %33 : vector<16x64xf32>
    %c0_41 = arith.constant 0 : index
    %c0_42 = arith.constant 0 : index
    %35 = vector.load %arg3[%c0_41, %c0_42] : memref<1x64xf32, #tpu.memory_space<vmem>>, vector<1x64xf32>
    %36 = vector.broadcast %35 : vector<1x64xf32> to vector<16x64xf32>
    %37 = arith.addf %34, %36 : vector<16x64xf32>
    %cst_43 = arith.constant 0.000000e+00 : f32
    %38 = vector.broadcast %cst_43 : f32 to vector<16x64xf32>
    %39 = arith.cmpf ogt, %37, %38 : vector<16x64xf32>
    %cst_44 = arith.constant 1.000000e-01 : f32
    %40 = vector.broadcast %cst_44 : f32 to vector<16x64xf32>
    %41 = arith.mulf %40, %37 : vector<16x64xf32>
    %42 = arith.select %39, %37, %41 : vector<16x64xi1>, vector<16x64xf32>
    %43 = vector.shape_cast %42 : vector<16x64xf32> to vector<8x2x64xf32>
    %44 = vector.extract_strided_slice %43 {offsets = [0, 0, 0], sizes = [8, 1, 64], strides = [1, 1, 1]} : vector<8x2x64xf32> to vector<8x1x64xf32>
    %45 = vector.shape_cast %44 : vector<8x1x64xf32> to vector<8x64xf32>
    %46 = vector.extract_strided_slice %43 {offsets = [0, 1, 0], sizes = [8, 1, 64], strides = [1, 1, 1]} : vector<8x2x64xf32> to vector<8x1x64xf32>
    %47 = vector.shape_cast %46 : vector<8x1x64xf32> to vector<8x64xf32>
    %48 = arith.addf %45, %47 : vector<8x64xf32>
    %c0_45 = arith.constant 0 : index
    %c0_46 = arith.constant 0 : index
    %49 = vector.load %arg4[%c0_45, %c0_46] : memref<64x32xf32, #tpu.memory_space<vmem>>, vector<64x32xf32>
    %cst_47 = arith.constant dense<0.000000e+00> : vector<8x32xf32>
    %50 = tpu.matmul %48, %49, %cst_47 {dimension_numbers = #tpu.dot_dimension_numbers<[1], [0], [0], [1], [0, 0, 1, 1], [], []>} : vector<8x64xf32>, vector<64x32xf32>, vector<8x32xf32> -> vector<8x32xf32>
    %51 = vector.shape_cast %50 : vector<8x32xf32> to vector<1x8x32xf32>
    %c0_48 = arith.constant 0 : index
    %c0_49 = arith.constant 0 : index
    %c0_50 = arith.constant 0 : index
    %52 = vector.load %arg5[%c0_48, %c0_49, %c0_50] : memref<1x8x32xf32, #tpu.memory_space<vmem>>, vector<1x8x32xf32>
    tpu.vector_store %arg5[%c0_48, %c0_49, %c0_50], %51 {strides = array<i32>} : memref<1x8x32xf32, #tpu.memory_space<vmem>>, vector<1x8x32xf32>,
    return
  }
  func.func @transform_0(%arg0: i32) -> (i32, i32, i32) {
    %c0_i32 = arith.constant 0 : i32
    %c0_i32_0 = arith.constant 0 : i32
    %c0_i32_1 = arith.constant 0 : i32
    return %arg0, %c0_i32, %c0_i32_0 : i32, i32, i32
  }
  func.func @transform_1(%arg0: i32) -> (i32, i32, i32) {
    %c0_i32 = arith.constant 0 : i32
    %c0_i32_0 = arith.constant 0 : i32
    %c0_i32_1 = arith.constant 0 : i32
    %c0_i32_2 = arith.constant 0 : i32
    return %c0_i32, %c0_i32_0, %c0_i32_1 : i32, i32, i32
  }
  func.func @transform_2(%arg0: i32) -> (i32, i32) {
    %c0_i32 = arith.constant 0 : i32
    %c0_i32_0 = arith.constant 0 : i32
    %c0_i32_1 = arith.constant 0 : i32
    return %c0_i32, %c0_i32_0 : i32, i32
  }
  func.func @transform_3(%arg0: i32) -> (i32, i32) {
    %c0_i32 = arith.constant 0 : i32
    %c0_i32_0 = arith.constant 0 : i32
    %c0_i32_1 = arith.constant 0 : i32
    return %c0_i32, %c0_i32_0 : i32, i32
  }
  func.func @transform_4(%arg0: i32) -> (i32, i32, i32) {
    %c0_i32 = arith.constant 0 : i32
    %c0_i32_0 = arith.constant 0 : i32
    %c0_i32_1 = arith.constant 0 : i32
    return %arg0, %c0_i32, %c0_i32_0 : i32, i32, i32
  }
}

</mosaic_0001>

<bundles_post_ra>
// kernel: tpu_custom_call.1
= control target key start
LH: loop header
LB: loop body
LE: loop exit
PB: predicated region body
PF: predicated region fallthrough
CT: control target
= control target key end

     0   :  { %9 = vsyncpa [#allocation4], 0  ;;  %s1539_s0 = inlined_call_operand.vmem [shape: f32[2,16,48], index: 0, kind: input, shape index: {}]   ;;  %s1540_s1 = inlined_call_operand.hbm [shape: bf16[5,48,64], index: 1, kind: input, shape index: {}]   ;;  %s1541_s2 = inlined_call_operand.vmem [shape: f32[1,64], index: 2, kind: input, shape index: {}]   ;;  %s1542_s3 = inlined_call_operand.vmem [shape: f32[64,32], index: 3, kind: input, shape index: {}]   ;;  %s1543_s4 = inlined_call_operand.hbm [shape: f32[2,8,32], index: 4, kind: output, shape index: {}]  }
   0x1   :  { %10 = vsyncpa [#allocation5], 0 }
   0x2   :  { %12 = vsyncpa [#allocation5 + $0x1], 0  ;;  %s1334_s15 = smov 0   ;;  %s1336_s16 = smov 0  }
   0x3   :  { %s1338_s17 = smov 0   ;;  %s1340_s18 = smov 0  }
   0x4 LB: > { %s1355_s19 = sadd.s32 4294967295, %s1298_s18   ;;  %s965_s20 = sadd.s32 4294967294, %s1298_s18   ;;  %s1298_s18 = sphi %s1340_s18, %s1559_s18   ;;  %s1294_s17 = sphi %s1338_s17, %s1558_s17   ;;  %s1290_s16 = sphi %s1336_s16, %s1557_s16   ;;  %s1286_s15 = sphi %s1334_s15, %s1556_s15  }
   0x5   : > { %s1359_s21 = sadd.s32 1, %s1298_s18   ;;  %s114_s22 = sadd.s32 1, %s1294_s17 }
   0x6   : > { %s111_s23 = ssub.s32 %s1298_s18, %s1359_s21  ;;  %p124_p0 = scmp.ne.s32.totalorder %s1294_s17, %s1290_s16 }
   0x7   : > { %p112_p1 = scmp.eq.s32.totalorder %s111_s23, 0  ;;  %p125_p2 = scmp.eq.s32.totalorder %s1355_s19, 1 }
   0x8   : > { %p130_p3 = scmp.ne.s32.totalorder %s1290_s16, %s1286_s15  ;;  %p131_p4 = scmp.eq.s32.totalorder %s965_s20, 1 }
   0x9   : > { %s1370_s24 = scalar_select %p112_p1, %s1294_s17, %s114_s22  }
   0xa   : > { %p1372_p5 = por %p125_p2, %p124_p0  ;;  %p1376_p6 = por %p131_p4, %p130_p3 }
   0xb   : > { %p966_p7 = scmp.ge.s32.totalorder %s1298_s18, 1  ;;  %p138_p8 = scmp.lt.s32.totalorder %s1298_s18, 3 }
   0xc   : > { %s1547_s25 = scalar_select %p1372_p5, 1, 0 }
   0xd   : > { %s1548_s26 = scalar_select %p1376_p6, 1, 0 }
   0xe   : > { %p1544_p9 = scmp.eq.s32.totalorder %s1355_s19, 0  ;;  %p1383_p10 = pnand %p966_p7, %p138_p8 }
   0xf   : > { %s1300_s28 = smov [#allocation3]   ;;  %s1204_s7 = scalar_lea.hbm %s1540_s1, 1920 }
  0x10   : > { %s1549_s27 = scalar_select %p1383_p10, 1, 0 }
  0x11   : > { %s150_s29 = sshll.u32 %s1300_s28, 4  ;;  %p1134_p11 = pneg %p1383_p10  ;;  %s151_s29 = int_to_ptr.vmem [resolvable:$true] %s150_s29 }
  0x12   : > { %p1205_p13 = scmp.ne.s32.totalorder %s1540_s1, %s1204_s7  ;;  %p1211_p3 = scmp.lt.u32.totalorder %s1204_s7, %s1540_s1 }
  0x13   : > { %p1391_p12 = pnand %p1544_p9, %p1134_p11 }
  0x15   : > { %p1206_p0 = pneg %p1391_p12 }
  0x17   : > { %p1207_p1 = pnand %p1206_p0, %p1205_p13 }
  0x19   : > { %p1208_p2 = pneg %p1207_p1 }
  0x1b   : > { %p1213_p4 = pnand %p1211_p3, %p1208_p2 }
  0x1d   : > { %1216 = shalt.err (!%p1213_p4)
}
  0x1e   : > { %s1217_s12 = scalar_lea.vmem %s151_s29, 1920  ;;  %p1225_p9 = scmp.lt.s32.totalorder %s151_s29, %s151_s29 }
  0x1f   : > { %p1218_p7 = scmp.ne.s32.totalorder %s151_s29, %s1217_s12  ;;  %p1226_p6 = scmp.lt.s32.totalorder %s1217_s12, %s1217_s12 }
  0x21   : > { %p1220_p8 = pnand %p1218_p7, %p1206_p0  ;;  %p1227_p5 = por %p1226_p6, %p1225_p9 }
  0x23   : > { %p1221_p11 = pneg %p1220_p8 }
  0x25   : > { %p1228_p10 = pnand %p1227_p5, %p1221_p11 }
  0x27   : > { %1231 = shalt.err (!%p1228_p10)
}
  0x28   : > { %s1301_s13 = smov 64   ;;  %s1302_s14 = smov 4  }
  0x29   : > { %1137 = dma.hbm_to_vmem [thread:$0]  (!%p1391_p12), %s1540_s1, 1920, %s151_s29, [#allocation4], %s1301_s13, %s1301_s13, %s1302_s14  }
  0x2a   : > { %p1551_p13 = scmp.ne.s32.totalorder %s1549_s27, 0 }
  0x2b   : > { %p1552_p1 = scmp.eq.s32.totalorder (!%p1551_p13), %s1355_s19, 0 }
  0x2c   : > { %180 = sbr.rel (%p1551_p13) target bundleno = 569 (0x239), region = 36 }
  0x33   : > { %1277 = dma.done.wait (%p1552_p1), [#allocation4], 1920   ;;  %p1553_p0 = pmov %p1552_p1 }
  0x34   : > { %p206_p5 = scmp.lt.s32.totalorder %s1355_s19, 1  ;;  %vm214_vm0 = vcmask 385024   ;;  %v1303_v0 = vmov 0.0   ;;  %vm1304_vm1 = vmmov 0   ;;  %v1305_v1 = vmov 0   ;;  %v1185_v2 = vld [vmem:[#allocation3 + $0x18] sm:$0xff]  }
  0x35   : > { %1279 = vsyncadd (%p1553_p0), [#allocation4], 4294965376  ;;  %1047 = vmatprep.subr.bf16.mxu0 %v1303_v0  ;;  %1057 = vmatprep.subr.bf16.mxu1 %v1303_v0  ;;  %215 = vst.msk [vmem:[#allocation2] sm:$0x1] %vm214_vm0, %v1305_v1  ;;  %v1186_v3 = vld [vmem:[#allocation3] sm:$0xff]   ;;  %v1188_v5 = vld [vmem:[#allocation3 + $0x8] sm:$0xff]  }
  0x36   : > { %1053 = vmatprep.mubr.msk.bf16.mxu0 %vm1304_vm1, %v1303_v0  ;;  %1063 = vmatprep.mubr.msk.bf16.mxu1 %vm1304_vm1, %v1303_v0  ;;  %s207_s23 = scalar_select %p206_p5, %s1355_s19, 1  ;;  %v1187_v4 = vld [vmem:[#allocation3 + $0x20] sm:$0xff]   ;;  %v1189_v6 = vld [vmem:[#allocation3 + $0x28] sm:$0xff]   ;;  %vm224_vm2 = vcmask 1040384   ;;  %vm225_vm3 = vcmask 1044484   ;;  %v1190_v9 = vld [vmem:[#allocation3 + $0x10] sm:$0xff]  }
  0x37   : > { %1048 = vmatpush3.bf16.msra.mxu0 %v1185_v2  ;;  %1058 = vmatpush3.bf16.msra.mxu1 %v1186_v3  ;;  %vm235_vm4 = vcmask 388097   ;;  %vm226_vm5 = vmor %vm224_vm2, %vm225_vm3  ;;  %vm237_vm6 = vcmask 388096   ;;  %vm295_vm7 = vcmask 392192   ;;  %v1194_v21 = vld [vmem:[#allocation3 + $0x48] sm:$0xff]   ;;  %v1196_v28 = vld [vmem:[#allocation3 + $0x50] sm:$0xff]   ;;  %vm412_vm10 = vcmask 1046528  }
  0x38   : > { %s1015_s27 = sshll.u32 %s207_s23, 4  ;;  %1049 = vmatprep.subr.bf16.mxu0 %v1303_v0  ;;  %1059 = vmatprep.subr.bf16.mxu1 %v1303_v0  ;;  %vm264_vm8 = vsmask.f32 7424  ;;  %v1193_v40 = vld [vmem:[#allocation3 + $0x30] sm:$0xff]   ;;  %v1198_v41 = vld [vmem:[#allocation3 + $0x58] sm:$0xff]   ;;  %v1197_v47 = vld [vmem:[#allocation3 + $0x40] sm:$0xff]  }
  0x39   : > { %s210_s30 = scalar_lea.vmem %s1539_s0, %s1015_s27  ;;  %vm491_vm9 = vsmask.f32 6400  ;;  %v1195_v45 = vld [vmem:[#allocation3 + $0x38] sm:$0xff]   ;;  %v1200_v51 = vld [vmem:[#allocation3 + $0x60] sm:$0xff]   ;;  %v1202_v53 = vld [vmem:[#allocation3 + $0x68] sm:$0xff]   ;;  %vm584_vm11 = vcmask 1045504  }
  0x3a   : > { %v212_v7 = vld [vmem:[%s210_s30] sm:$0xff]  ;;  %v213_v8 = vld [vmem:[%s210_s30 + $0x8] sm:$0xff]  ;;  %v1306_v62 = vmov 0.0|0.0   ;;  %v745_v63 = vld [vmem:[%s1542_s3 + $0x10] sm:$0xff]  ;;  %vm791_vm14 = vcmask 1041409   ;;  %vm793_vm15 = vcmask 1042434  }
  0x3b   : > { %1050 = vmatpush3.bf16.msra.mxu0 %v1187_v4  ;;  %1060 = vmatpush3.bf16.msra.mxu1 %v1188_v5  ;;  %v1016_v10 = vpack.c.bf16 %v212_v7, %v212_v7  ;;  %v1017_v11 = vpack.c.bf16 %v213_v8, %v213_v8  ;;  %v1203_v55 = vld [vmem:[#allocation3 + $0x70] sm:$0xff]   ;;  %v744_v60 = vld [vmem:[%s1542_s3 + $0x8] sm:$0xff]  ;;  %v749_v5 = vld [vmem:[%s1542_s3 + $0x30] sm:$0xff]  ;;  %vm801_vm2 = vcmask 1046534   ;;  %s203_s6 = sand.u32 1, %s1290_s16   ;;  %s1012_s8 = sshll.u32 %s1355_s19, 7 }
  0x3c   : > { %1051 = vmatprep.subr.bf16.mxu0 %v1303_v0  ;;  %1061 = vmatprep.subr.bf16.mxu1 %v1303_v0  ;;  %v743_v59 = vld [vmem:[%s1542_s3] sm:$0xff]  ;;  %v748_v3 = vld [vmem:[%s1542_s3 + $0x28] sm:$0xff]  ;;  %s971_s7 = sshll.u32 %s203_s6, 3  ;;  %s1497_s13 = scalar_lea.hbm %s1543_s4, %s1012_s8 }
  0x3d   : > { %v227_v12 = vrot.slane %v1016_v10, 7  ;;  %v229_v13 = vrot.slane %v1017_v11, 7  ;;  %v1117_v61 = vpack.c.bf16 %v744_v60, %v743_v59  ;;  %v747_v2 = vld [vmem:[%s1542_s3 + $0x20] sm:$0xff]  ;;  %s205_s9 = scalar_lea.vmem [#allocation6], %s971_s7  ;;  %s881_s14 = scalar_lea.sflag [#allocation5], %s203_s6 }
  0x3e   : > { %v1123_v4 = vpack.c.bf16 %v748_v3, %v747_v2  ;;  %s894_s10 = sshll.u32 %s205_s9, 4  ;;  %p1554_p9 = scmp.ne.s32.totalorder %s1547_s25, 0  ;;  %s1499_s10 = int_to_ptr.vmem [resolvable:$true] %s894_s10 }
  0x3f   : > { %1052 = vmatpush3.bf16.msra.mxu0 %v1189_v6  ;;  %1062 = vmatpush3.bf16.msra.mxu1 %v1190_v9  ;;  %v228_v14 = vrot.slane %v227_v12, 4  ;;  %v231_v15 = vrot.slane %v229_v13, 4  ;;  %236 = vst.msk [vmem:[#allocation2] sm:$0xe] %vm235_vm4, %v227_v12  ;;  %v750_v6 = vld [vmem:[%s1542_s3 + $0x38] sm:$0xff]  ;;  %vm803_vm4 = vcmask 1047559  }
  0x40   : > { %1067 = vmatprep.subr.bf16.mxu0 %v1303_v0  ;;  %1077 = vmatprep.subr.bf16.mxu1 %v1303_v0  ;;  %v1126_v7 = vpack.c.bf16 %v750_v6, %v749_v5  ;;  %s1232_s20 = scalar_lea.vmem %s1499_s10, 128  ;;  %s1308_s19 = smov [#allocation6]  }
  0x41   : > { %v230_v16 = vsel %vm226_vm5, %v228_v14, %v229_v13  ;;  %239 = vst.msk [vmem:[#allocation2 + $0x8] sm:$0x1] %vm214_vm0, %v231_v15  ;;  %vm795_vm0 = vcmask 1043459   ;;  %vm805_vm5 = vcmask 523264   ;;  %p1233_p6 = scmp.ne.s32.totalorder %s1499_s10, %s1232_s20  ;;  %s1236_s22 = sshll.u32 %s1308_s19, 4  ;;  %s1237_s22 = int_to_ptr.vmem [resolvable:$false] %s1236_s22 }
  0x42   : > { %238 = vst.msk [vmem:[#allocation2 + $0x4] sm:$0xf] %vm237_vm6, %v230_v16  ;;  %vm878_vm6 = vcmask 261120   ;;  %s1238_s23 = scalar_lea.vmem %s1237_s22, 256  ;;  %p1239_p2 = scmp.lt.s32.totalorder %s1499_s10, %s1237_s22 }
  0x43   : > { %p1234_p10 = pnand %p1233_p6, %p1554_p9  ;;  %p1240_p3 = scmp.lt.s32.totalorder %s1238_s23, %s1232_s20 }
  0x45   : > { %p1235_p12 = pneg %p1234_p10  ;;  %p1241_p4 = por %p1240_p3, %p1239_p2 }
  0x46   : > { %v240_v17 = vld [vmem:[#allocation2] sm:$0xf] }
  0x47   : > { %v401_v18 = vld [vmem:[#allocation2] sm:$0xe]  ;;  %p1242_p7 = pnand %p1241_p4, %p1235_p12 }
  0x48   : > { %v1192_v19 = vld [vmem:[#allocation2 + $0x8] ss:$0 sps:$4 sm:$0x11]   ;;  %v573_v52 = vld [vmem:[#allocation2] sm:$0xc] }
  0x49   : > { %v241_v20 = vld [vmem:[#allocation2 + $0x4] sm:$0xf]  ;;  %v273_v23 = vshll.u32 %v1192_v19, 16  ;;  %v1437_v25 = vld [vmem:[#allocation2 + $0x8] ss:$0 sps:$4 sm:$0x33]  }
  0x4a   : > { %v976_v22 = vcombine.low %v240_v17, %v241_v20  ;;  %v986_v24 = vcombine.low %v401_v18, %v241_v20  ;;  %v501_v31 = vshrl.u32 %v1437_v25, 16  ;;  %v504_v32 = vshll.u32 %v1437_v25, 16 }
  0x4b   : > { %v275_v34 = vrot.slane %v273_v23, 1  ;;  %v414_v49 = vrot.slane %v1192_v19, 1  ;;  %v996_v54 = vcombine.low %v573_v52, %v241_v20  ;;  %v586_v57 = vrot.slane %v1437_v25, 2 }
  0x4c   : > { %v266_v26 = vshrl.u32 %v976_v22, 16  ;;  %v268_v27 = vshll.u32 %v976_v22, 16  ;;  %1064 = vmatmul.mubr.msk.bf16.vlgmr.msra.gmra.mrb[0].mxu1 %vm295_vm7, %v976_v22  ;;  %v493_v29 = vshrl.u32 %v986_v24, 16  ;;  %v496_v30 = vshll.u32 %v986_v24, 16 }
  0x4d   : > { %1078 = vmatpush3.bf16.msra.mxu1 %v1194_v21  ;;  %1083 = vmatprep.mubr.msk.bf16.mxu1 %vm1304_vm1, %v1303_v0  ;;  %v503_v37 = vrot.slane %v501_v31, 1  ;;  %v506_v38 = vrot.slane %v504_v32, 2  ;;  %v413_v48 = vrot.slane %v986_v24, 1  ;;  %v585_v56 = vrot.slane %v996_v54, 2 }
  0x4e   : > { %v270_v33 = vrot.slane %v268_v27, 1  ;;  %1079 = vmatprep.subr.bf16.mxu1 %v1303_v0  ;;  %v495_v35 = vrot.slane %v493_v29, 1  ;;  %v498_v36 = vrot.slane %v496_v30, 2  ;;  %v1307_v30 = vmov 1983009808  }
  0x4f   : > { %v507_v43 = vor.u32 %v506_v38, %v503_v37  ;;  %v415_v50 = vsel %vm412_vm10, %v413_v48, %v414_v49  ;;  %v587_v58 = vsel %vm584_vm11, %v585_v56, %v586_v57  ;;  %v671_v31 = vunpack.c.l.s4 %v1307_v30 }
  0x50   : > { %v271_v39 = vor.u32 %v270_v33, %v266_v26  ;;  %v499_v42 = vor.u32 %v498_v36, %v495_v35  ;;  %v673_v32 = vlaneseq }
  0x51   : > { %1080 = vmatpush3.bf16.msra.mxu1 %v1196_v28  ;;  %v672_v35 = vunpack.c.0.s8 %v671_v31 }
  0x52   : > { %v276_v44 = vsel %vm264_vm8, %v271_v39, %v275_v34  ;;  %1081 = vmatprep.subr.bf16.mxu1 %v1303_v0  ;;  %v508_v46 = vsel %vm491_vm9, %v499_v42, %v507_v43  ;;  %v1001_v34 = vld [vmem:[%s1541_s2] ss:$0 sm:$0xff]  ;;  %v674_v36 = vshrl.u32 %v673_v32, 7 }
  0x53   : > { %1054 = vmatmul.mubr.msk.bf16.vlgmr.msra.gmra.mrb[0].mxu0 %vm295_vm7, %v276_v44 }
  0x54   : > { %1068 = vmatpush3.bf16.msra.mxu0 %v1193_v40  ;;  %1073 = vmatprep.mubr.msk.bf16.mxu0 %vm1304_vm1, %v1303_v0  ;;  %v675_v43 = vsub.s32 %v672_v35, %v674_v36 }
  0x55   : > { %1069 = vmatprep.subr.bf16.mxu0 %v1303_v0  ;;  %1082 = vmatpush3.bf16.msra.mxu1 %v1198_v41 }
  0x56   : > { %1116 = vmatprep.subr.bf16.mxu1 %v1306_v62 }
  0x58   : > { %1070 = vmatpush3.bf16.msra.mxu0 %v1195_v45  ;;  %1084 = vmatmul.mubr.msk.bf16.vlgmr.msra.gmra.mrb[4].mxu1 %vm295_vm7, %v508_v46 }
  0x59   : > { %1071 = vmatprep.subr.bf16.mxu0 %v1303_v0  ;;  %1113 = vmatprep.mubr.msk.f32.mxu1 %vm1304_vm1, %v1303_v0 }
  0x5a   : > { %1118 = vmatpush3.bf16.msra.mxu1 %v1117_v61 }
  0x5b   : > { %1119 = vmatprep.subr.bf16.mxu1 %v1306_v62 }
  0x5c   : > { %1072 = vmatpush3.bf16.msra.mxu0 %v1197_v47 }
  0x5d   : > { %1087 = vmatprep.subr.bf16.mxu0 %v1303_v0 }
  0x5f   : > { %1074 = vmatmul.mubr.msk.bf16.vlgmr.msra.gmra.mrb[4].mxu0 %vm295_vm7, %v415_v50 }
  0x60   : > { %1088 = vmatpush3.bf16.msra.mxu0 %v1200_v51  ;;  %1093 = vmatprep.mubr.msk.bf16.mxu0 %vm1304_vm1, %v1303_v0  ;;  %vm799_vm1 = vcmask 1045509  }
  0x61   : > { %1089 = vmatprep.subr.bf16.mxu0 %v1303_v0 }
  0x64   : > { %1090 = vmatpush3.bf16.msra.mxu0 %v1202_v53 }
  0x65   : > { %1091 = vmatprep.subr.bf16.mxu0 %v1303_v0  ;;  %v746_v0 = vld [vmem:[%s1542_s3 + $0x18] sm:$0xff] }
  0x66   : > { %v1120_v1 = vpack.c.bf16 %v746_v0, %v745_v63 }
  0x68   : > { %1092 = vmatpush3.bf16.msra.mxu0 %v1203_v55  ;;  %1121 = vmatpush3.bf16.msra.mxu1 %v1120_v1  ;;  %v761_v55 = vsub.s32 0, %v674_v36 }
  0x69   : > { %1122 = vmatprep.subr.bf16.mxu1 %v1306_v62 }
  0x6b   : > { %1094 = vmatmul.mubr.msk.bf16.vlgmr.msra.gmra.mrb[8].mxu0 %vm295_vm7, %v587_v58 }
  0x6c   : > { %1124 = vmatpush3.bf16.msra.mxu1 %v1123_v4 }
  0x6d   : > { %1125 = vmatprep.subr.bf16.mxu1 %v1306_v62 }
  0x70   : > { %1127 = vmatpush3.bf16.msra.mxu1 %v1126_v7 }
 0x11f   : > { %v394_v8 = vpop.f32.mrb[0].mxu1 }
 0x120   : > { %v1065_v9 = vpop.f32.mrb[1].mxu1 }
 0x121   : > { %v397_v10 = vpop.f32.mrb[2].mxu1 }
 0x122   : > { %v1066_v11 = vpop.f32.mrb[3].mxu1 }
 0x126   : > { %v333_v12 = vpop.f32.mrb[0].mxu0 }
 0x127   : > { %v395_v13 = vadd.f32 %v394_v8, %v333_v12  ;;  %v1055_v14 = vpop.f32.mrb[1].mxu0 }
 0x128   : > { %v336_v15 = vpop.f32.mrb[2].mxu0 }
 0x129   : > { %v398_v16 = vadd.f32 %v397_v10, %v336_v15  ;;  %v1056_v17 = vpop.f32.mrb[3].mxu0 }
 0x12b   : > { %v564_v18 = vpop.f32.mrb[4].mxu1 }
 0x12c   : > { %v1085_v19 = vpop.f32.mrb[5].mxu1 }
 0x12d   : > { %v567_v20 = vpop.f32.mrb[6].mxu1 }
 0x12e   : > { %v1086_v21 = vpop.f32.mrb[7].mxu1 }
 0x132   : > { %v471_v22 = vpop.f32.mrb[4].mxu0 }
 0x133   : > { %v478_v23 = vadd.f32 %v471_v22, %v395_v13  ;;  %v1075_v24 = vpop.f32.mrb[5].mxu0 }
 0x134   : > { %v474_v25 = vpop.f32.mrb[6].mxu0 }
 0x135   : > { %v479_v26 = vadd.f32 %v474_v25, %v398_v16  ;;  %v571_v27 = vadd.f32 %v564_v18, %v478_v23  ;;  %v1076_v28 = vpop.f32.mrb[7].mxu0 }
 0x137   : > { %v572_v29 = vadd.f32 %v567_v20, %v479_v26 }
 0x13e   : > { %v643_v33 = vpop.f32.mrb[8].mxu0 }
 0x13f   : > { %v650_v37 = vadd.f32 %v643_v33, %v571_v27  ;;  %v1095_v38 = vpop.f32.mrb[9].mxu0 }
 0x140   : > { %v646_v39 = vpop.f32.mrb[10].mxu0 }
 0x141   : > { %v659_v40 = vadd.f32 %v1001_v34, %v650_v37  ;;  %v651_v41 = vadd.f32 %v646_v39, %v572_v29  ;;  %v1096_v42 = vpop.f32.mrb[11].mxu0 }
 0x143   : > { %vm661_vm12 = vcmp.gt.f32.partialorder %v659_v40, 0.0  ;;  %v663_v44 = vmul.f32 0.1, %v659_v40  ;;  %v660_v45 = vadd.f32 %v1001_v34, %v651_v41 }
 0x145   : > { %v665_v46 = vsel %vm661_vm12, %v659_v40, %v663_v44  ;;  %vm662_vm13 = vcmp.gt.f32.partialorder %v660_v45, 0.0  ;;  %v664_v47 = vmul.f32 0.1, %v660_v45 }
 0x146   : > { %v669_v48 = vcombine.high %v665_v46, %v665_v46  ;;  %v676_v49 = vrot.slane %v665_v46, %v675_v43 }
 0x147   : > { %v666_v50 = vsel %vm662_vm13, %v660_v45, %v664_v47 }
 0x148   : > { %v683_v51 = vrot.slane %v669_v48, %v675_v43  ;;  %v684_v52 = vcombine.high %v676_v49, %v676_v49  ;;  %v1002_v53 = vrot.slane %v676_v49, 9  ;;  %v686_v54 = vcombine.high %v666_v50, %v666_v50 }
 0x149   : > { %v693_v56 = vrot.slane %v666_v50, %v675_v43 }
 0x14a   : > { %v685_v57 = vcombine.high %v683_v51, %v683_v51  ;;  %v1003_v58 = vrot.slane %v684_v52, 9  ;;  %v1004_v59 = vrot.slane %v683_v51, 9  ;;  %v735_v60 = vadd.f32 %v1002_v53, %v676_v49 }
 0x14b   : > { %v700_v61 = vrot.slane %v686_v54, %v675_v43  ;;  %v701_v62 = vcombine.high %v693_v56, %v693_v56  ;;  %v1006_v63 = vrot.slane %v693_v56, 9 }
 0x14c   : > { %v1005_v0 = vrot.slane %v685_v57, 9  ;;  %v736_v1 = vadd.f32 %v1003_v58, %v684_v52  ;;  %v737_v2 = vadd.f32 %v1004_v59, %v683_v51  ;;  %v762_v8 = vrot.slane %v735_v60, %v761_v55 }
 0x14d   : > { %v1007_v3 = vrot.slane %v701_v62, 9  ;;  %v1008_v4 = vrot.slane %v700_v61, 9  ;;  %v739_v5 = vadd.f32 %v1006_v63, %v693_v56  ;;  %v702_v6 = vcombine.high %v700_v61, %v700_v61 }
 0x14e   : > { %v738_v7 = vadd.f32 %v1005_v0, %v685_v57  ;;  %v766_v9 = vrot.slane %v736_v1, %v761_v55  ;;  %v770_v10 = vrot.slane %v737_v2, %v761_v55 }
 0x14f   : > { %v740_v11 = vadd.f32 %v1007_v3, %v701_v62  ;;  %v1009_v12 = vrot.slane %v702_v6, 9  ;;  %v741_v13 = vadd.f32 %v1008_v4, %v700_v61  ;;  %v778_v16 = vrot.slane %v739_v5, %v761_v55 }
 0x150   : > { %v774_v14 = vrot.slane %v738_v7, %v761_v55  ;;  %v792_v15 = vsel %vm791_vm14, %v766_v9, %v762_v8 }
 0x151   : > { %v742_v17 = vadd.f32 %v1009_v12, %v702_v6  ;;  %v794_v18 = vsel %vm793_vm15, %v770_v10, %v792_v15  ;;  %v782_v19 = vrot.slane %v740_v11, %v761_v55  ;;  %v786_v21 = vrot.slane %v741_v13, %v761_v55 }
 0x152   : > { %v796_v20 = vsel %vm795_vm0, %v774_v14, %v794_v18 }
 0x153   : > { %v798_v22 = vsel %vm225_vm3, %v778_v16, %v796_v20  ;;  %v790_v23 = vrot.slane %v742_v17, %v761_v55 }
 0x154   : > { %v800_v24 = vsel %vm799_vm1, %v782_v19, %v798_v22 }
 0x155   : > { %v802_v25 = vsel %vm801_vm2, %v786_v21, %v800_v24 }
 0x156   : > { %v804_v26 = vsel %vm803_vm4, %v790_v23, %v802_v25 }
 0x157   : > { %1114 = vmatmul.mubr.msk.f32.vlgmr.msra.gmra.mrb[8].mxu1 %vm805_vm5, %v804_v26 }
 0x22a   : > { %v874_v27 = vpop.f32.mrb[8].mxu1 }
 0x22b   : > { %879 = vst.msk [vmem:[%s205_s9] sm:$0xff] %vm878_vm6, %v874_v27  ;;  %v1115_v28 = vpop.f32.mrb[9].mxu1 }
 0x22c   : > { %1245 = shalt.err (!%p1242_p7)
}
 0x22d   : > { %s1246_s27 = scalar_lea.hbm %s1497_s13, 128  ;;  %s1250_s30 = scalar_lea.hbm %s1543_s4, 256 }
 0x22e   : > { %p1247_p8 = scmp.ne.s32.totalorder %s1497_s13, %s1246_s27  ;;  %p1251_p1 = scmp.lt.u32.totalorder %s1497_s13, %s1543_s4 }
 0x22f   : > { %p1252_p0 = scmp.lt.u32.totalorder %s1250_s30, %s1246_s27  ;;  %p1254_p6 = scmp.lt.u32.totalorder %s1246_s27, %s1497_s13 }
 0x230   : > { %p1248_p11 = pnand %p1247_p8, %p1554_p9 }
 0x231   : > { %p1253_p5 = por %p1252_p0, %p1251_p1 }
 0x232   : > { %p1249_p13 = pneg %p1248_p11 }
 0x233   : > { %p1255_p10 = por %p1254_p6, %p1253_p5 }
 0x235   : > { %p1256_p12 = pnand %p1255_p10, %p1249_p13 }
 0x237   : > { %1259 = shalt.err (!%p1256_p12)
}
 0x238   : > { %1132 = dma.vmem_to_hbm [thread:$0]  (%p1554_p9), %s1499_s10, 128, %s1497_s13, %s881_s14  }
 0x239 PF: > { %p1144_p2 = scmp.ge.s32.totalorder %s1298_s18, 2  ;;  %s906_s7 = sand.u32 1, %s1286_s15  }
 0x23a   : > { %p1555_p3 = scmp.ne.s32.totalorder %s1548_s26, 0  ;;  %s907_s8 = scalar_lea.sflag [#allocation5], %s906_s7 }
 0x23c   : > { %p1139_p4 = pnand %p1144_p2, %p1555_p3 }
 0x23e   : > { %1281 = dma.done.wait (!%p1139_p4), %s907_s8, 128  }
 0x23f   : > { %1283 = vsyncadd (!%p1139_p4), %s907_s8, 4294967168  ;;  %p15_p7 = scmp.ge.s32.totalorder %s1359_s21, 4   ;;  %s1556_s15 = smov %s1290_s16 }
 0x240   : > { %s1557_s16 = smov %s1294_s17  ;;  %s1558_s17 = smov %s1370_s24 }
 0x241   : > { %s1559_s18 = smov %s1359_s21  ;;  %17 = sbr.rel (!%p15_p7) target bundleno = 4 (0x4), region = 80 }
 0x248   :  { %912 = vsyncpa [#allocation4], 1 }
 0x249   :  { %914 = vsyncpa [#allocation4 + $0x1], 1 }
 0x24a   :  { %915 = vsyncpa [#allocation5], 1 }
 0x24b   :  { %917 = vsyncpa [#allocation5 + $0x1], 1 }

</bundles_post_ra>
